<compile_context>
chip_gen: v7x
topology: tpu7x:2x2x1
jax: 0.10.0
libtpu: 0.0.40
codegen_flags: <defaults>
</compile_context>

<pallas_src>
import functools
import math

import jax
import jax.numpy as jnp
import numpy as np
from jax import lax
from jax.experimental import pallas as pl
from jax.experimental.pallas import tpu as pltpu


# ----------------------------------------------------------------------------- kernel


def _channel_group_sum(v, cout, w_len):
    """v: (1, w_len*cout).  Returns a same-shape vector where every lane holds the
    sum over all W positions of its channel (lane index % cout), using circular
    lane rolls on the XLU (no reshape, no matmul)."""
    total = v
    if w_len & (w_len - 1) == 0:          # power of two -> log2(w_len) roll+add steps
        shift = cout
        while shift < cout * w_len:
            total = total + pltpu.roll(total, shift, axis=1)
            shift *= 2
    else:                                  # generic fallback
        for k in range(1, w_len):
            total = total + pltpu.roll(v, k * cout, axis=1)
    return total


def _fused_convblock_kernel(n_layers, N, H, W, KH, x_ref, *rest):
    """Fused (conv3x3 'same' -> BN(batch stats) -> ReLU) x n_layers.

    rest = [B_0..B_{L-1},            (KH, W*Cin_l, W*Cout_l)  banded conv weights
            gamma_0..gamma_{L-1},    (1, W*Cout_l)            BN gamma, channel-tiled
            beta_0..beta_{L-1},      (1, W*Cout_l)            BN beta,  channel-tiled
            o_ref,                   (N*H, W*Cout_last)       lane-dense output slab
            xpad_0..xpad_{L-1}]      (N, H+2*ph, W*Cin_l)     VMEM scratch (H halo)
    """
    b_refs = rest[:n_layers]
    g_refs = rest[n_layers:2 * n_layers]
    bt_refs = rest[2 * n_layers:3 * n_layers]
    o_ref = rest[3 * n_layers]
    xpad_refs = rest[3 * n_layers + 1:]

    ph = KH // 2
    inv_m = 1.0 / float(N * H * W)           # biased variance over (N, H, W)

    cur = x_ref[...]                          # (N, H, W*Cin) slab
    for l in range(n_layers):
        xpad = xpad_refs[l]
        wc_in = xpad.shape[-1]                # W * Cin_l
        wc_out = b_refs[l].shape[-1]          # W * Cout_l
        cout = wc_out // W

        # ---- stage input with zeroed H-halo rows (in-kernel "same" padding) ----
        if ph > 0:
            zero_halo = jnp.zeros((N, ph, wc_in), jnp.float32)
            xpad[:, 0:ph, :] = zero_halo
            xpad[:, ph + H:, :] = zero_halo
        xpad[:, ph:ph + H, :] = cur

        # ---- convolution: KH fat MXU matmuls against block-banded weights ----
        acc = jnp.zeros((N * H, wc_out), jnp.float32)
        for kh in range(KH):
            xk = xpad[:, kh:kh + H, :].reshape(N * H, wc_in)
            acc = acc + jnp.dot(xk, b_refs[l][kh],
                                preferred_element_type=jnp.float32)
        # (conv bias omitted: it cancels exactly under batch-stat BN)

        # ---- BatchNorm2d (training-mode batch stats) + ReLU epilogue ----
        # One pass: per-column sum and sum-of-squares, reduced per channel via rolls.
        s1 = jnp.sum(acc, axis=0, keepdims=True)                      # (1, W*Cout)
        s2 = jnp.sum(acc * acc, axis=0, keepdims=True)                # (1, W*Cout)
        mean_t = _channel_group_sum(s1, cout, W) * inv_m              # per-channel mean, tiled
        ex2_t = _channel_group_sum(s2, cout, W) * inv_m               # per-channel E[x^2], tiled
        var_t = jnp.maximum(ex2_t - mean_t * mean_t, 0.0)             # biased variance (clamped)
        scale_t = g_refs[l][...] * lax.rsqrt(var_t + 1e-5)            # gamma / std, per channel
        shift_t = bt_refs[l][...] - mean_t * scale_t                  # beta - mean*scale
        y = jnp.maximum(acc * scale_t + shift_t, 0.0)                 # single FMA + ReLU

        if l + 1 < n_layers:
            cur = y.reshape(N, H, wc_out)     # stays in VMEM/registers for next layer
        else:
            o_ref[...] = y                    # lane-dense (N*H, 128) store


# ----------------------------------------------------------------------------- wrapper


def _aligned_channels(c, W):
    """Smallest channel count >= c such that W*c_pad is a multiple of 128 (full lanes).
    Skips padding when it would more than double the slab width."""
    unit = 128 // math.gcd(W, 128)
    c_pad = -(-c // unit) * unit
    if W * c_pad > 2 * max(W * c, 128):
        return c
    return c_pad


def _banded_weight(w, W):
    """Fold the KW taps and Cin into a block-banded matrix.

    w: (KH, KW, Cin, Cout) -> (KH, W*Cin, W*Cout) with
      B[kh, wi*Cin + ci, wo*Cout + co] = w[kh, wi - wo + KW//2, ci, co]
    and zeros where the tap falls outside [0, KW)  (== zero 'same' padding in W).
    """
    KH, KW, Cin, Cout = w.shape
    pw = KW // 2
    wi = jnp.arange(W)[:, None]
    wo = jnp.arange(W)[None, :]
    kw = wi - wo + pw                               # (W, W)
    valid = (kw >= 0) & (kw < KW)
    g = w[:, jnp.clip(kw, 0, KW - 1)]               # (KH, W, W, Cin, Cout)
    g = jnp.where(valid[None, :, :, None, None], g, 0.0)
    return jnp.transpose(g, (0, 1, 3, 2, 4)).reshape(KH, W * Cin, W * Cout)


@jax.jit
def conv_block_forward(x_nchw, params):
    """ConvBlock.forward — NCHW in / NCHW out, like the PyTorch module."""
    N, Cin, H, W = x_nchw.shape
    n_layers = len(params)
    KH = params[0][0].shape[0]
    assert KH % 2 == 1, "'same' padding requires an odd kernel size"
    ph = KH // 2
    Cout = params[-1][0].shape[-1]

    # NCHW -> lane-friendly (N, H, W*Cin_pad) slab; pad channels to fill 128 lanes.
    cin_pad = _aligned_channels(Cin, W)
    x_nhwc = jnp.transpose(x_nchw, (0, 2, 3, 1)).astype(jnp.float32)
    if cin_pad > Cin:
        x_nhwc = jnp.pad(x_nhwc, ((0, 0), (0, 0), (0, 0), (0, cin_pad - Cin)))
    x_slab = x_nhwc.reshape(N, H, W * cin_pad)

    b_mats, gammas_t, betas_t, scratch = [], [], [], []
    prev_pad = cin_pad
    for (w, b, gamma, beta) in params:
        _, _, cin_l, cout_l = w.shape
        cout_pad = _aligned_channels(cout_l, W)
        wf = w.astype(jnp.float32)
        if prev_pad > cin_l or cout_pad > cout_l:
            wf = jnp.pad(wf, ((0, 0), (0, 0), (0, prev_pad - cin_l),
                              (0, cout_pad - cout_l)))
        b_mats.append(_banded_weight(wf, W))
        # conv bias `b` is a provable no-op under batch-stat BN -> folded away.
        g = gamma.astype(jnp.float32)
        bt = beta.astype(jnp.float32)
        if cout_pad > cout_l:
            g = jnp.pad(g, (0, cout_pad - cout_l))   # padded channels: gamma=0, beta=0
            bt = jnp.pad(bt, (0, cout_pad - cout_l))
        gammas_t.append(jnp.tile(g, W).reshape(1, W * cout_pad))
        betas_t.append(jnp.tile(bt, W).reshape(1, W * cout_pad))
        scratch.append(pltpu.VMEM((N, H + 2 * ph, W * prev_pad), jnp.float32))
        prev_pad = cout_pad
    cout_pad_last = prev_pad

    kernel = functools.partial(_fused_convblock_kernel, n_layers, N, H, W, KH)
    vmem = pl.BlockSpec(memory_space=pltpu.MemorySpace.VMEM)

    out_slab = pl.pallas_call(
        kernel,
        out_shape=jax.ShapeDtypeStruct((N * H, W * cout_pad_last), jnp.float32),
        in_specs=[vmem] * (1 + 3 * n_layers),
        out_specs=vmem,
        scratch_shapes=scratch,
        compiler_params=pltpu.CompilerParams(vmem_limit_bytes=32 * 1024 * 1024),
    )(x_slab, *b_mats, *gammas_t, *betas_t)

    # (N*H, W*Cout_pad) slab -> strip channel padding -> NCHW
    y = out_slab.reshape(N, H, W, cout_pad_last)[..., :Cout]
    return jnp.transpose(y, (0, 3, 1, 2))


# ----------------------------------------------------------------------------- params / reference


def init_conv_block_params(key, in_channels, filters, layers_per_block=2, kernel_size=3):
    """PyTorch-like fan-in uniform init for conv (weight+bias), BN gamma=1 beta=0."""
    params = []
    cin = in_channels
    for _ in range(layers_per_block):
        key, kw_, kb_ = jax.random.split(key, 3)
        fan_in = cin * kernel_size * kernel_size
        bound = 1.0 / np.sqrt(fan_in)
        w = jax.random.uniform(kw_, (kernel_size, kernel_size, cin, filters),
                               minval=-bound, maxval=bound, dtype=jnp.float32)
        b = jax.random.uniform(kb_, (filters,), minval=-bound, maxval=bound,
                               dtype=jnp.float32)
        gamma = jnp.ones((filters,), jnp.float32)
        beta = jnp.zeros((filters,), jnp.float32)
        params.append((w, b, gamma, beta))
        cin = filters
    return params


def reference_forward(x_nchw, params):
    """Pure-JAX reference (lax conv + bias + BN batch stats + ReLU)."""
    x = jnp.transpose(x_nchw, (0, 2, 3, 1)).astype(jnp.float32)
    for (w, b, gamma, beta) in params:
        y = lax.conv_general_dilated(
            x, w, window_strides=(1, 1), padding="SAME",
            dimension_numbers=("NHWC", "HWIO", "NHWC"))
        y = y + b
        mean = jnp.mean(y, axis=(0, 1, 2), keepdims=True)
        var = jnp.mean((y - mean) ** 2, axis=(0, 1, 2), keepdims=True)
        y = (y - mean) * lax.rsqrt(var + 1e-5) * gamma + beta
        x = jnp.maximum(y, 0.0)
    return jnp.transpose(x, (0, 3, 1, 2))


# ----------------------------------------------------------------------------- main


if __name__ == "__main__":
    key = jax.random.PRNGKey(0)
    k_x, k_p = jax.random.split(key)

    # Small shapes consistent with the module: batch=2, in_channels=4, H=W=16, filters=8
    N, Cin, H, W = 2, 4, 16, 16
    filters, layers_per_block, kernel_size = 8, 2, 3

    x = jax.random.normal(k_x, (N, Cin, H, W), dtype=jnp.float32)
    params = init_conv_block_params(k_p, Cin, filters, layers_per_block, kernel_size)

    out = jax.block_until_ready(conv_block_forward(x, params))
    ref = jax.block_until_ready(reference_forward(x, params))

    assert out.shape == (N, filters, H, W), out.shape
    np.testing.assert_allclose(np.asarray(out), np.asarray(ref), rtol=1e-4, atol=1e-4)

    print("KERNEL_OK")
</pallas_src>

<mosaic_0001>
module attributes {stable_mosaic.version = 11 : i64} {
  func.func @_fused_convblock_kernel(%arg0: memref<2x16x128xf32, #tpu.memory_space<vmem>>, %arg1: memref<3x128x128xf32, #tpu.memory_space<vmem>>, %arg2: memref<3x128x128xf32, #tpu.memory_space<vmem>>, %arg3: memref<1x128xf32, #tpu.memory_space<vmem>>, %arg4: memref<1x128xf32, #tpu.memory_space<vmem>>, %arg5: memref<1x128xf32, #tpu.memory_space<vmem>>, %arg6: memref<1x128xf32, #tpu.memory_space<vmem>>, %arg7: memref<32x128xf32, #tpu.memory_space<vmem>>, %arg8: memref<2x18x128xf32, #tpu.memory_space<vmem>>, %arg9: memref<2x18x128xf32, #tpu.memory_space<vmem>>) attributes {dimension_semantics = [], scalar_prefetch = 0 : i64, scratch_operands = 2 : i64, tpu.core_type = #tpu.core_type<tc>} {
    %c0 = arith.constant 0 : index
    %c0_0 = arith.constant 0 : index
    %c0_1 = arith.constant 0 : index
    %0 = vector.load %arg0[%c0, %c0_0, %c0_1] : memref<2x16x128xf32, #tpu.memory_space<vmem>>, vector<2x16x128xf32>
    %cst = arith.constant 0.000000e+00 : f32
    %1 = vector.broadcast %cst : f32 to vector<2x1x128xf32>
    %c0_2 = arith.constant 0 : index
    %c0_3 = arith.constant 0 : index
    %c0_4 = arith.constant 0 : index
    %2 = vector.load %arg8[%c0_2, %c0_3, %c0_4] : memref<2x18x128xf32, #tpu.memory_space<vmem>>, vector<2x1x128xf32>
    tpu.vector_store %arg8[%c0_2, %c0_3, %c0_4], %1 {strides = array<i32>} : memref<2x18x128xf32, #tpu.memory_space<vmem>>, vector<2x1x128xf32>,
    %c0_5 = arith.constant 0 : index
    %c17 = arith.constant 17 : index
    %c0_6 = arith.constant 0 : index
    %3 = vector.load %arg8[%c0_5, %c17, %c0_6] : memref<2x18x128xf32, #tpu.memory_space<vmem>>, vector<2x1x128xf32>
    tpu.vector_store %arg8[%c0_5, %c17, %c0_6], %1 {strides = array<i32>} : memref<2x18x128xf32, #tpu.memory_space<vmem>>, vector<2x1x128xf32>,
    %c0_7 = arith.constant 0 : index
    %c1 = arith.constant 1 : index
    %c0_8 = arith.constant 0 : index
    %4 = vector.load %arg8[%c0_7, %c1, %c0_8] : memref<2x18x128xf32, #tpu.memory_space<vmem>>, vector<2x16x128xf32>
    tpu.vector_store %arg8[%c0_7, %c1, %c0_8], %0 {strides = array<i32>} : memref<2x18x128xf32, #tpu.memory_space<vmem>>, vector<2x16x128xf32>,
    %cst_9 = arith.constant 0.000000e+00 : f32
    %5 = vector.broadcast %cst_9 : f32 to vector<32x128xf32>
    %c0_10 = arith.constant 0 : index
    %c0_11 = arith.constant 0 : index
    %c0_12 = arith.constant 0 : index
    %6 = vector.load %arg8[%c0_10, %c0_11, %c0_12] : memref<2x18x128xf32, #tpu.memory_space<vmem>>, vector<2x16x128xf32>
    %7 = vector.shape_cast %6 : vector<2x16x128xf32> to vector<32x128xf32>
    %c0_13 = arith.constant 0 : index
    %c0_14 = arith.constant 0 : index
    %c0_15 = arith.constant 0 : index
    %8 = vector.load %arg1[%c0_13, %c0_14, %c0_15] : memref<3x128x128xf32, #tpu.memory_space<vmem>>, vector<1x128x128xf32>
    %9 = vector.shape_cast %8 : vector<1x128x128xf32> to vector<128x128xf32>
    %cst_16 = arith.constant dense<0.000000e+00> : vector<32x128xf32>
    %10 = tpu.matmul %7, %9, %cst_16 {dimension_numbers = #tpu.dot_dimension_numbers<[1], [0], [0], [1], [0, 0, 1, 1], [], []>} : vector<32x128xf32>, vector<128x128xf32>, vector<32x128xf32> -> vector<32x128xf32>
    %11 = arith.addf %5, %10 : vector<32x128xf32>
    %c0_17 = arith.constant 0 : index
    %c1_18 = arith.constant 1 : index
    %c0_19 = arith.constant 0 : index
    %12 = vector.load %arg8[%c0_17, %c1_18, %c0_19] : memref<2x18x128xf32, #tpu.memory_space<vmem>>, vector<2x16x128xf32>
    %13 = vector.shape_cast %12 : vector<2x16x128xf32> to vector<32x128xf32>
    %c1_20 = arith.constant 1 : index
    %c0_21 = arith.constant 0 : index
    %c0_22 = arith.constant 0 : index
    %14 = vector.load %arg1[%c1_20, %c0_21, %c0_22] : memref<3x128x128xf32, #tpu.memory_space<vmem>>, vector<1x128x128xf32>
    %15 = vector.shape_cast %14 : vector<1x128x128xf32> to vector<128x128xf32>
    %cst_23 = arith.constant dense<0.000000e+00> : vector<32x128xf32>
    %16 = tpu.matmul %13, %15, %cst_23 {dimension_numbers = #tpu.dot_dimension_numbers<[1], [0], [0], [1], [0, 0, 1, 1], [], []>} : vector<32x128xf32>, vector<128x128xf32>, vector<32x128xf32> -> vector<32x128xf32>
    %17 = arith.addf %11, %16 : vector<32x128xf32>
    %c0_24 = arith.constant 0 : index
    %c2 = arith.constant 2 : index
    %c0_25 = arith.constant 0 : index
    %18 = vector.load %arg8[%c0_24, %c2, %c0_25] : memref<2x18x128xf32, #tpu.memory_space<vmem>>, vector<2x16x128xf32>
    %19 = vector.shape_cast %18 : vector<2x16x128xf32> to vector<32x128xf32>
    %c2_26 = arith.constant 2 : index
    %c0_27 = arith.constant 0 : index
    %c0_28 = arith.constant 0 : index
    %20 = vector.load %arg1[%c2_26, %c0_27, %c0_28] : memref<3x128x128xf32, #tpu.memory_space<vmem>>, vector<1x128x128xf32>
    %21 = vector.shape_cast %20 : vector<1x128x128xf32> to vector<128x128xf32>
    %cst_29 = arith.constant dense<0.000000e+00> : vector<32x128xf32>
    %22 = tpu.matmul %19, %21, %cst_29 {dimension_numbers = #tpu.dot_dimension_numbers<[1], [0], [0], [1], [0, 0, 1, 1], [], []>} : vector<32x128xf32>, vector<128x128xf32>, vector<32x128xf32> -> vector<32x128xf32>
    %23 = arith.addf %17, %22 : vector<32x128xf32>
    %cst_30 = arith.constant dense<0.000000e+00> : vector<128xf32>
    %24 = vector.multi_reduction <add>, %23, %cst_30 [0] : vector<32x128xf32> to vector<128xf32>
    %25 = vector.shape_cast %24 : vector<128xf32> to vector<1x128xf32>
    %26 = arith.mulf %23, %23 : vector<32x128xf32>
    %cst_31 = arith.constant dense<0.000000e+00> : vector<128xf32>
    %27 = vector.multi_reduction <add>, %26, %cst_31 [0] : vector<32x128xf32> to vector<128xf32>
    %28 = vector.shape_cast %27 : vector<128xf32> to vector<1x128xf32>
    %c8_i32 = arith.constant 8 : i32
    %29 = tpu.dynamic_rotate %25 by %c8_i32 dim 1 : vector<1x128xf32>, i32 -> vector<1x128xf32>
    %30 = arith.addf %25, %29 : vector<1x128xf32>
    %c16_i32 = arith.constant 16 : i32
    %31 = tpu.dynamic_rotate %30 by %c16_i32 dim 1 : vector<1x128xf32>, i32 -> vector<1x128xf32>
    %32 = arith.addf %30, %31 : vector<1x128xf32>
    %c32_i32 = arith.constant 32 : i32
    %33 = tpu.dynamic_rotate %32 by %c32_i32 dim 1 : vector<1x128xf32>, i32 -> vector<1x128xf32>
    %34 = arith.addf %32, %33 : vector<1x128xf32>
    %c64_i32 = arith.constant 64 : i32
    %35 = tpu.dynamic_rotate %34 by %c64_i32 dim 1 : vector<1x128xf32>, i32 -> vector<1x128xf32>
    %36 = arith.addf %34, %35 : vector<1x128xf32>
    %cst_32 = arith.constant 0.001953125 : f32
    %37 = vector.broadcast %cst_32 : f32 to vector<1x128xf32>
    %38 = arith.mulf %36, %37 : vector<1x128xf32>
    %c8_i32_33 = arith.constant 8 : i32
    %39 = tpu.dynamic_rotate %28 by %c8_i32_33 dim 1 : vector<1x128xf32>, i32 -> vector<1x128xf32>
    %40 = arith.addf %28, %39 : vector<1x128xf32>
    %c16_i32_34 = arith.constant 16 : i32
    %41 = tpu.dynamic_rotate %40 by %c16_i32_34 dim 1 : vector<1x128xf32>, i32 -> vector<1x128xf32>
    %42 = arith.addf %40, %41 : vector<1x128xf32>
    %c32_i32_35 = arith.constant 32 : i32
    %43 = tpu.dynamic_rotate %42 by %c32_i32_35 dim 1 : vector<1x128xf32>, i32 -> vector<1x128xf32>
    %44 = arith.addf %42, %43 : vector<1x128xf32>
    %c64_i32_36 = arith.constant 64 : i32
    %45 = tpu.dynamic_rotate %44 by %c64_i32_36 dim 1 : vector<1x128xf32>, i32 -> vector<1x128xf32>
    %46 = arith.addf %44, %45 : vector<1x128xf32>
    %cst_37 = arith.constant 0.001953125 : f32
    %47 = vector.broadcast %cst_37 : f32 to vector<1x128xf32>
    %48 = arith.mulf %46, %47 : vector<1x128xf32>
    %49 = arith.mulf %38, %38 : vector<1x128xf32>
    %50 = arith.subf %48, %49 : vector<1x128xf32>
    %cst_38 = arith.constant 0.000000e+00 : f32
    %51 = vector.broadcast %cst_38 : f32 to vector<1x128xf32>
    %52 = arith.maximumf %50, %51 : vector<1x128xf32>
    %c0_39 = arith.constant 0 : index
    %c0_40 = arith.constant 0 : index
    %53 = vector.load %arg3[%c0_39, %c0_40] : memref<1x128xf32, #tpu.memory_space<vmem>>, vector<1x128xf32>
    %cst_41 = arith.constant 9.99999974E-6 : f32
    %54 = vector.broadcast %cst_41 : f32 to vector<1x128xf32>
    %55 = arith.addf %52, %54 : vector<1x128xf32>
    %56 = math.rsqrt %55 : vector<1x128xf32>
    %57 = arith.mulf %53, %56 : vector<1x128xf32>
    %c0_42 = arith.constant 0 : index
    %c0_43 = arith.constant 0 : index
    %58 = vector.load %arg5[%c0_42, %c0_43] : memref<1x128xf32, #tpu.memory_space<vmem>>, vector<1x128xf32>
    %59 = arith.mulf %38, %57 : vector<1x128xf32>
    %60 = arith.subf %58, %59 : vector<1x128xf32>
    %61 = vector.broadcast %57 : vector<1x128xf32> to vector<32x128xf32>
    %62 = arith.mulf %23, %61 : vector<32x128xf32>
    %63 = vector.broadcast %60 : vector<1x128xf32> to vector<32x128xf32>
    %64 = arith.addf %62, %63 : vector<32x128xf32>
    %cst_44 = arith.constant 0.000000e+00 : f32
    %65 = vector.broadcast %cst_44 : f32 to vector<32x128xf32>
    %66 = arith.maximumf %64, %65 : vector<32x128xf32>
    %67 = vector.shape_cast %66 : vector<32x128xf32> to vector<2x16x128xf32>
    %cst_45 = arith.constant 0.000000e+00 : f32
    %68 = vector.broadcast %cst_45 : f32 to vector<2x1x128xf32>
    %c0_46 = arith.constant 0 : index
    %c0_47 = arith.constant 0 : index
    %c0_48 = arith.constant 0 : index
    %69 = vector.load %arg9[%c0_46, %c0_47, %c0_48] : memref<2x18x128xf32, #tpu.memory_space<vmem>>, vector<2x1x128xf32>
    tpu.vector_store %arg9[%c0_46, %c0_47, %c0_48], %68 {strides = array<i32>} : memref<2x18x128xf32, #tpu.memory_space<vmem>>, vector<2x1x128xf32>,
    %c0_49 = arith.constant 0 : index
    %c17_50 = arith.constant 17 : index
    %c0_51 = arith.constant 0 : index
    %70 = vector.load %arg9[%c0_49, %c17_50, %c0_51] : memref<2x18x128xf32, #tpu.memory_space<vmem>>, vector<2x1x128xf32>
    tpu.vector_store %arg9[%c0_49, %c17_50, %c0_51], %68 {strides = array<i32>} : memref<2x18x128xf32, #tpu.memory_space<vmem>>, vector<2x1x128xf32>,
    %c0_52 = arith.constant 0 : index
    %c1_53 = arith.constant 1 : index
    %c0_54 = arith.constant 0 : index
    %71 = vector.load %arg9[%c0_52, %c1_53, %c0_54] : memref<2x18x128xf32, #tpu.memory_space<vmem>>, vector<2x16x128xf32>
    tpu.vector_store %arg9[%c0_52, %c1_53, %c0_54], %67 {strides = array<i32>} : memref<2x18x128xf32, #tpu.memory_space<vmem>>, vector<2x16x128xf32>,
    %cst_55 = arith.constant 0.000000e+00 : f32
    %72 = vector.broadcast %cst_55 : f32 to vector<32x128xf32>
    %c0_56 = arith.constant 0 : index
    %c0_57 = arith.constant 0 : index
    %c0_58 = arith.constant 0 : index
    %73 = vector.load %arg9[%c0_56, %c0_57, %c0_58] : memref<2x18x128xf32, #tpu.memory_space<vmem>>, vector<2x16x128xf32>
    %74 = vector.shape_cast %73 : vector<2x16x128xf32> to vector<32x128xf32>
    %c0_59 = arith.constant 0 : index
    %c0_60 = arith.constant 0 : index
    %c0_61 = arith.constant 0 : index
    %75 = vector.load %arg2[%c0_59, %c0_60, %c0_61] : memref<3x128x128xf32, #tpu.memory_space<vmem>>, vector<1x128x128xf32>
    %76 = vector.shape_cast %75 : vector<1x128x128xf32> to vector<128x128xf32>
    %cst_62 = arith.constant dense<0.000000e+00> : vector<32x128xf32>
    %77 = tpu.matmul %74, %76, %cst_62 {dimension_numbers = #tpu.dot_dimension_numbers<[1], [0], [0], [1], [0, 0, 1, 1], [], []>} : vector<32x128xf32>, vector<128x128xf32>, vector<32x128xf32> -> vector<32x128xf32>
    %78 = arith.addf %72, %77 : vector<32x128xf32>
    %c0_63 = arith.constant 0 : index
    %c1_64 = arith.constant 1 : index
    %c0_65 = arith.constant 0 : index
    %79 = vector.load %arg9[%c0_63, %c1_64, %c0_65] : memref<2x18x128xf32, #tpu.memory_space<vmem>>, vector<2x16x128xf32>
    %80 = vector.shape_cast %79 : vector<2x16x128xf32> to vector<32x128xf32>
    %c1_66 = arith.constant 1 : index
    %c0_67 = arith.constant 0 : index
    %c0_68 = arith.constant 0 : index
    %81 = vector.load %arg2[%c1_66, %c0_67, %c0_68] : memref<3x128x128xf32, #tpu.memory_space<vmem>>, vector<1x128x128xf32>
    %82 = vector.shape_cast %81 : vector<1x128x128xf32> to vector<128x128xf32>
    %cst_69 = arith.constant dense<0.000000e+00> : vector<32x128xf32>
    %83 = tpu.matmul %80, %82, %cst_69 {dimension_numbers = #tpu.dot_dimension_numbers<[1], [0], [0], [1], [0, 0, 1, 1], [], []>} : vector<32x128xf32>, vector<128x128xf32>, vector<32x128xf32> -> vector<32x128xf32>
    %84 = arith.addf %78, %83 : vector<32x128xf32>
    %c0_70 = arith.constant 0 : index
    %c2_71 = arith.constant 2 : index
    %c0_72 = arith.constant 0 : index
    %85 = vector.load %arg9[%c0_70, %c2_71, %c0_72] : memref<2x18x128xf32, #tpu.memory_space<vmem>>, vector<2x16x128xf32>
    %86 = vector.shape_cast %85 : vector<2x16x128xf32> to vector<32x128xf32>
    %c2_73 = arith.constant 2 : index
    %c0_74 = arith.constant 0 : index
    %c0_75 = arith.constant 0 : index
    %87 = vector.load %arg2[%c2_73, %c0_74, %c0_75] : memref<3x128x128xf32, #tpu.memory_space<vmem>>, vector<1x128x128xf32>
    %88 = vector.shape_cast %87 : vector<1x128x128xf32> to vector<128x128xf32>
    %cst_76 = arith.constant dense<0.000000e+00> : vector<32x128xf32>
    %89 = tpu.matmul %86, %88, %cst_76 {dimension_numbers = #tpu.dot_dimension_numbers<[1], [0], [0], [1], [0, 0, 1, 1], [], []>} : vector<32x128xf32>, vector<128x128xf32>, vector<32x128xf32> -> vector<32x128xf32>
    %90 = arith.addf %84, %89 : vector<32x128xf32>
    %cst_77 = arith.constant dense<0.000000e+00> : vector<128xf32>
    %91 = vector.multi_reduction <add>, %90, %cst_77 [0] : vector<32x128xf32> to vector<128xf32>
    %92 = vector.shape_cast %91 : vector<128xf32> to vector<1x128xf32>
    %93 = arith.mulf %90, %90 : vector<32x128xf32>
    %cst_78 = arith.constant dense<0.000000e+00> : vector<128xf32>
    %94 = vector.multi_reduction <add>, %93, %cst_78 [0] : vector<32x128xf32> to vector<128xf32>
    %95 = vector.shape_cast %94 : vector<128xf32> to vector<1x128xf32>
    %c8_i32_79 = arith.constant 8 : i32
    %96 = tpu.dynamic_rotate %92 by %c8_i32_79 dim 1 : vector<1x128xf32>, i32 -> vector<1x128xf32>
    %97 = arith.addf %92, %96 : vector<1x128xf32>
    %c16_i32_80 = arith.constant 16 : i32
    %98 = tpu.dynamic_rotate %97 by %c16_i32_80 dim 1 : vector<1x128xf32>, i32 -> vector<1x128xf32>
    %99 = arith.addf %97, %98 : vector<1x128xf32>
    %c32_i32_81 = arith.constant 32 : i32
    %100 = tpu.dynamic_rotate %99 by %c32_i32_81 dim 1 : vector<1x128xf32>, i32 -> vector<1x128xf32>
    %101 = arith.addf %99, %100 : vector<1x128xf32>
    %c64_i32_82 = arith.constant 64 : i32
    %102 = tpu.dynamic_rotate %101 by %c64_i32_82 dim 1 : vector<1x128xf32>, i32 -> vector<1x128xf32>
    %103 = arith.addf %101, %102 : vector<1x128xf32>
    %cst_83 = arith.constant 0.001953125 : f32
    %104 = vector.broadcast %cst_83 : f32 to vector<1x128xf32>
    %105 = arith.mulf %103, %104 : vector<1x128xf32>
    %c8_i32_84 = arith.constant 8 : i32
    %106 = tpu.dynamic_rotate %95 by %c8_i32_84 dim 1 : vector<1x128xf32>, i32 -> vector<1x128xf32>
    %107 = arith.addf %95, %106 : vector<1x128xf32>
    %c16_i32_85 = arith.constant 16 : i32
    %108 = tpu.dynamic_rotate %107 by %c16_i32_85 dim 1 : vector<1x128xf32>, i32 -> vector<1x128xf32>
    %109 = arith.addf %107, %108 : vector<1x128xf32>
    %c32_i32_86 = arith.constant 32 : i32
    %110 = tpu.dynamic_rotate %109 by %c32_i32_86 dim 1 : vector<1x128xf32>, i32 -> vector<1x128xf32>
    %111 = arith.addf %109, %110 : vector<1x128xf32>
    %c64_i32_87 = arith.constant 64 : i32
    %112 = tpu.dynamic_rotate %111 by %c64_i32_87 dim 1 : vector<1x128xf32>, i32 -> vector<1x128xf32>
    %113 = arith.addf %111, %112 : vector<1x128xf32>
    %cst_88 = arith.constant 0.001953125 : f32
    %114 = vector.broadcast %cst_88 : f32 to vector<1x128xf32>
    %115 = arith.mulf %113, %114 : vector<1x128xf32>
    %116 = arith.mulf %105, %105 : vector<1x128xf32>
    %117 = arith.subf %115, %116 : vector<1x128xf32>
    %cst_89 = arith.constant 0.000000e+00 : f32
    %118 = vector.broadcast %cst_89 : f32 to vector<1x128xf32>
    %119 = arith.maximumf %117, %118 : vector<1x128xf32>
    %c0_90 = arith.constant 0 : index
    %c0_91 = arith.constant 0 : index
    %120 = vector.load %arg4[%c0_90, %c0_91] : memref<1x128xf32, #tpu.memory_space<vmem>>, vector<1x128xf32>
    %cst_92 = arith.constant 9.99999974E-6 : f32
    %121 = vector.broadcast %cst_92 : f32 to vector<1x128xf32>
    %122 = arith.addf %119, %121 : vector<1x128xf32>
    %123 = math.rsqrt %122 : vector<1x128xf32>
    %124 = arith.mulf %120, %123 : vector<1x128xf32>
    %c0_93 = arith.constant 0 : index
    %c0_94 = arith.constant 0 : index
    %125 = vector.load %arg6[%c0_93, %c0_94] : memref<1x128xf32, #tpu.memory_space<vmem>>, vector<1x128xf32>
    %126 = arith.mulf %105, %124 : vector<1x128xf32>
    %127 = arith.subf %125, %126 : vector<1x128xf32>
    %128 = vector.broadcast %124 : vector<1x128xf32> to vector<32x128xf32>
    %129 = arith.mulf %90, %128 : vector<32x128xf32>
    %130 = vector.broadcast %127 : vector<1x128xf32> to vector<32x128xf32>
    %131 = arith.addf %129, %130 : vector<32x128xf32>
    %cst_95 = arith.constant 0.000000e+00 : f32
    %132 = vector.broadcast %cst_95 : f32 to vector<32x128xf32>
    %133 = arith.maximumf %131, %132 : vector<32x128xf32>
    %c0_96 = arith.constant 0 : index
    %c0_97 = arith.constant 0 : index
    %134 = vector.load %arg7[%c0_96, %c0_97] : memref<32x128xf32, #tpu.memory_space<vmem>>, vector<32x128xf32>
    tpu.vector_store %arg7[%c0_96, %c0_97], %133 {strides = array<i32>} : memref<32x128xf32, #tpu.memory_space<vmem>>, vector<32x128xf32>,
    return
  }
}

</mosaic_0001>

<bundles_post_ra>
// kernel: tile.23
= control target key start
LH: loop header
LB: loop body
LE: loop exit
PB: predicated region body
PF: predicated region fallthrough
CT: control target
= control target key end

     0   :  { %s28_s0 = inlined_call_operand.vmem [shape: f32[8], index: 0, kind: input, shape index: {}]   ;;  %s29_s1 = inlined_call_operand.vmem [shape: f32[16,8], index: 1, kind: output, shape index: {}]  }
   0x1   :  { %v4_v0 = vld [vmem:[%s28_s0] ss:$0 sm:$0xff] }
   0x2   :  { %5 = vst [vmem:[%s29_s1] sm:$0xff] %v4_v0  ;;  %8 = vst [vmem:[%s29_s1 + $0x8] sm:$0xff] %v4_v0 }

// kernel: tile.24
= control target key start
LH: loop header
LB: loop body
LE: loop exit
PB: predicated region body
PF: predicated region fallthrough
CT: control target
= control target key end

     0   :  { %s131_s10 = smov 120   ;;  %s132_s11 = smov 104   ;;  %vm3_vm0 = vcmask 64512   ;;  %vm9_vm1 = vcmask 1048512   ;;  %vm15_vm2 = vcmask 982912   ;;  %vm21_vm3 = vcmask 917312   ;;  %s207_s0 = inlined_call_operand.vmem [shape: f32[16,8], index: 0, kind: input, shape index: {}]   ;;  %s208_s1 = inlined_call_operand.vmem [shape: f32[1,128], index: 1, kind: output, shape index: {}]  }
   0x1   :  { %v101_v0 = vld [vmem:[%s207_s0 + $0xf] sm:$0x1]   ;;  %v103_v1 = vld [vmem:[%s207_s0 + $0xd] sm:$0x1]   ;;  %v102_v2 = vld [vmem:[%s207_s0 + $0xe] sm:$0x1]  }
   0x2   :  { %7 = vrot.lane.b32.xlu0 %v101_v0, %s131_s10  ;;  %19 = vrot.lane.b32.xlu1 %v103_v1, %s132_s11  ;;  %v104_v3 = vld [vmem:[%s207_s0 + $0xc] sm:$0x1]   ;;  %s133_s16 = smov 112   ;;  %s134_s17 = smov 96   ;;  %v105_v4 = vld [vmem:[%s207_s0 + $0xb] sm:$0x1]  }
   0x3   :  { %v106_v5 = vld [vmem:[%s207_s0 + $0xa] sm:$0x1]   ;;  %v2_v6 = vld [vmem:[%s207_s0] sm:$0x1]   ;;  %s135_s24 = smov 88   ;;  %s136_s25 = smov 80  }
   0x4   :  { %4 = vst.msk [vmem:[#allocation0] sm:$0x1] %vm3_vm0, %v2_v6   ;;  %v107_v7 = vld [vmem:[%s207_s0 + $0x9] sm:$0x1]   ;;  %v108_v8 = vld [vmem:[%s207_s0 + $0x8] sm:$0x1]  }
   0x5   :  { %s137_s30 = smov 72   ;;  %s138_s2 = smov 64   ;;  %v109_v9 = vld [vmem:[%s207_s0 + $0x7] sm:$0x1]   ;;  %v110_v10 = vld [vmem:[%s207_s0 + $0x6] sm:$0x1]  }
   0x6   :  { %13 = vrot.lane.b32.xlu0 %v102_v2, %s133_s16  ;;  %25 = vrot.lane.b32.xlu1 %v104_v3, %s134_s17  ;;  %s139_s7 = smov 56   ;;  %s140_s8 = smov 48   ;;  %v111_v11 = vld [vmem:[%s207_s0 + $0x5] sm:$0x1]   ;;  %v112_v12 = vld [vmem:[%s207_s0 + $0x4] sm:$0x1]  }
   0x7   :  { %s141_s13 = smov 40   ;;  %s142_s14 = smov 32   ;;  %v113_v13 = vld [vmem:[%s207_s0 + $0x3] sm:$0x1]   ;;  %v114_v14 = vld [vmem:[%s207_s0 + $0x2] sm:$0x1]  }
   0x8   :  { %s143_s19 = smov 24   ;;  %s144_s20 = smov 16   ;;  %v115_v15 = vld [vmem:[%s207_s0 + $0x1] sm:$0x1]   ;;  %vm27_vm4 = vcmask 851712   ;;  %vm33_vm5 = vcmask 786112  }
   0x9   :  { %s145_s0 = smov 8   ;;  %vm39_vm6 = vcmask 720512   ;;  %vm45_vm7 = vcmask 654912   ;;  %vm51_vm8 = vcmask 589312   ;;  %vm57_vm9 = vcmask 523712  }
   0xa   :  { %31 = vrot.lane.b32.xlu0 %v105_v4, %s135_s24  ;;  %37 = vrot.lane.b32.xlu1 %v106_v5, %s136_s25  ;;  %vm63_vm10 = vcmask 458112   ;;  %vm69_vm11 = vcmask 392512   ;;  %vm75_vm12 = vcmask 326912   ;;  %vm81_vm13 = vcmask 261312  }
   0xb   :  { %vm87_vm14 = vcmask 195712   ;;  %vm93_vm15 = vcmask 130112  }
   0xe   :  { %43 = vrot.lane.b32.xlu0 %v107_v7, %s137_s30  ;;  %49 = vrot.lane.b32.xlu1 %v108_v8, %s138_s2 }
  0x12   :  { %55 = vrot.lane.b32.xlu0 %v109_v9, %s139_s7  ;;  %61 = vrot.lane.b32.xlu1 %v110_v10, %s140_s8 }
  0x16   :  { %67 = vrot.lane.b32.xlu0 %v111_v11, %s141_s13  ;;  %73 = vrot.lane.b32.xlu1 %v112_v12, %s142_s14 }
  0x1a   :  { %79 = vrot.lane.b32.xlu0 %v113_v13, %s143_s19  ;;  %85 = vrot.lane.b32.xlu1 %v114_v14, %s144_s20 }
  0x1e   :  { %91 = vrot.lane.b32.xlu0 %v115_v15, %s145_s0 }
  0x74   :  { %v8_v16 = vpop.permute.xlu0 %7   ;;  %v20_v17 = vpop.permute.xlu1 %19  }
  0x75   :  { %10 = vst.msk [vmem:[#allocation0] sm:$0x1] %vm9_vm1, %v8_v16  }
  0x78   :  { %v14_v18 = vpop.permute.xlu0 %13   ;;  %v26_v19 = vpop.permute.xlu1 %25  }
  0x79   :  { %16 = vst.msk [vmem:[#allocation0] sm:$0x1] %vm15_vm2, %v14_v18  }
  0x7a   :  { %22 = vst.msk [vmem:[#allocation0] sm:$0x1] %vm21_vm3, %v20_v17  }
  0x7b   :  { %28 = vst.msk [vmem:[#allocation0] sm:$0x1] %vm27_vm4, %v26_v19  }
  0x7c   :  { %v32_v20 = vpop.permute.xlu0 %31   ;;  %v38_v21 = vpop.permute.xlu1 %37  }
  0x7d   :  { %34 = vst.msk [vmem:[#allocation0] sm:$0x1] %vm33_vm5, %v32_v20  }
  0x7e   :  { %40 = vst.msk [vmem:[#allocation0] sm:$0x1] %vm39_vm6, %v38_v21  }
  0x80   :  { %v44_v22 = vpop.permute.xlu0 %43   ;;  %v50_v23 = vpop.permute.xlu1 %49  }
  0x81   :  { %46 = vst.msk [vmem:[#allocation0] sm:$0x1] %vm45_vm7, %v44_v22  }
  0x82   :  { %52 = vst.msk [vmem:[#allocation0] sm:$0x1] %vm51_vm8, %v50_v23  }
  0x84   :  { %v56_v24 = vpop.permute.xlu0 %55   ;;  %v62_v25 = vpop.permute.xlu1 %61  }
  0x85   :  { %58 = vst.msk [vmem:[#allocation0] sm:$0x1] %vm57_vm9, %v56_v24  }
  0x86   :  { %64 = vst.msk [vmem:[#allocation0] sm:$0x1] %vm63_vm10, %v62_v25  }
  0x88   :  { %v68_v26 = vpop.permute.xlu0 %67   ;;  %v74_v27 = vpop.permute.xlu1 %73  }
  0x89   :  { %70 = vst.msk [vmem:[#allocation0] sm:$0x1] %vm69_vm11, %v68_v26  }
  0x8a   :  { %76 = vst.msk [vmem:[#allocation0] sm:$0x1] %vm75_vm12, %v74_v27  }
  0x8c   :  { %v80_v28 = vpop.permute.xlu0 %79   ;;  %v86_v29 = vpop.permute.xlu1 %85  }
  0x8d   :  { %82 = vst.msk [vmem:[#allocation0] sm:$0x1] %vm81_vm13, %v80_v28  }
  0x8e   :  { %88 = vst.msk [vmem:[#allocation0] sm:$0x1] %vm87_vm14, %v86_v29  }
  0x90   :  { %v92_v30 = vpop.permute.xlu0 %91  }
  0x91   :  { %94 = vst.msk [vmem:[#allocation0] sm:$0x1] %vm93_vm15, %v92_v30  }
  0x98   :  { %v98_v31 = vld [vmem:[#allocation0] sm:$0x1] }
  0x99   :  { %100 = vst [vmem:[%s208_s1] sm:$0x1] %v98_v31 }

// kernel: conv_block_forward.1
= control target key start
LH: loop header
LB: loop body
LE: loop exit
PB: predicated region body
PF: predicated region fallthrough
CT: control target
= control target key end

     0   :  { %v1489_v3 = vmov 0.0   ;;  %s1491_s10 = smov 16   ;;  %s1492_s11 = smov 32   ;;  %s1922_s1 = inlined_call_operand.vmem [shape: f32[3,128,128], index: 1, kind: input, shape index: {}]   ;;  %s1923_s0 = inlined_call_operand.vmem [shape: f32[2,16,128], index: 0, kind: input, shape index: {}]   ;;  %s1924_s2 = inlined_call_operand.vmem [shape: f32[3,128,128], index: 2, kind: input, shape index: {}]   ;;  %s1925_s3 = inlined_call_operand.vmem [shape: f32[1,128], index: 3, kind: input, shape index: {}]   ;;  %s1926_s5 = inlined_call_operand.vmem [shape: f32[1,128], index: 5, kind: input, shape index: {}]   ;;  %s1927_s4 = inlined_call_operand.vmem [shape: f32[1,128], index: 4, kind: input, shape index: {}]   ;;  %s1928_s6 = inlined_call_operand.vmem [shape: f32[1,128], index: 6, kind: input, shape index: {}]   ;;  %s1929_s7 = inlined_call_operand.vmem [shape: f32[32,128], index: 7, kind: output, shape index: {}]  }
   0x1   :  { %v860_v0 = vld [vmem:[%s1922_s1 + $0x80] sm:$0xff]  ;;  %v861_v1 = vld [vmem:[%s1922_s1 + $0x88] sm:$0xff]  ;;  %v862_v2 = vld [vmem:[%s1922_s1 + $0x90] sm:$0xff]  ;;  %30 = vst [vmem:[#allocation2] sm:$0x1] %v1489_v3  ;;  %s1493_s23 = smov 64  }
   0x2   :  { %31 = vst [vmem:[#allocation2 + $0x18] sm:$0x1] %v1489_v3  ;;  %32 = vst [vmem:[#allocation2 + $0x11] sm:$0x1] %v1489_v3  ;;  %v1272_v4 = vpack.c.bf16 %v861_v1, %v860_v0  ;;  %v863_v5 = vld [vmem:[%s1922_s1 + $0x98] sm:$0xff]  ;;  %v864_v7 = vld [vmem:[%s1922_s1 + $0xa0] sm:$0xff] }
   0x3   :  { %33 = vst [vmem:[#allocation2 + $0x29] sm:$0x1] %v1489_v3  ;;  %441 = vst [vmem:[#allocation3] sm:$0x1] %v1489_v3  ;;  %v1276_v6 = vpack.c.bf16 %v863_v5, %v862_v2  ;;  %v865_v8 = vld [vmem:[%s1922_s1 + $0xa8] sm:$0xff]  ;;  %v26_v10 = vld [vmem:[%s1923_s0] sm:$0xff] }
   0x4   :  { %442 = vst [vmem:[#allocation3 + $0x18] sm:$0x1] %v1489_v3  ;;  %443 = vst [vmem:[#allocation3 + $0x11] sm:$0x1] %v1489_v3  ;;  %1273 = vmatprep.subr.bf16.mxu0 %v1272_v4  ;;  %v1280_v9 = vpack.c.bf16 %v865_v8, %v864_v7  ;;  %v866_v11 = vld [vmem:[%s1922_s1 + $0xb0] sm:$0xff]  ;;  %v867_v12 = vld [vmem:[%s1922_s1 + $0xb8] sm:$0xff]  ;;  %1076 = vmatprep.mubr.f32.mxu0 %v26_v10 }
   0x5   :  { %444 = vst [vmem:[#allocation3 + $0x29] sm:$0x1] %v1489_v3  ;;  %1275 = vmatpush3.bf16.msra.mxu0 %v1272_v4  ;;  %34 = vst [vmem:[#allocation2 + $0x1] sm:$0xff] %v26_v10  ;;  %v27_v13 = vld [vmem:[%s1923_s0 + $0x8] sm:$0xff]  ;;  %v1284_v14 = vpack.c.bf16 %v867_v12, %v866_v11  ;;  %v868_v15 = vld [vmem:[%s1922_s1 + $0xc0] sm:$0xff] }
   0x6   :  { %1277 = vmatprep.subr.bf16.mxu0 %v1276_v6  ;;  %35 = vst [vmem:[#allocation2 + $0x9] sm:$0xff] %v27_v13  ;;  %v869_v16 = vld [vmem:[%s1922_s1 + $0xc8] sm:$0xff]  ;;  %v28_v17 = vld [vmem:[%s1923_s0 + $0x10] sm:$0xff]  ;;  %v29_v18 = vld [vmem:[%s1923_s0 + $0x18] sm:$0xff] }
   0x7   :  { %36 = vst [vmem:[#allocation2 + $0x19] sm:$0xff] %v28_v17  ;;  %37 = vst [vmem:[#allocation2 + $0x21] sm:$0xff] %v29_v18  ;;  %v1288_v19 = vpack.c.bf16 %v869_v16, %v868_v15  ;;  %v870_v20 = vld [vmem:[%s1922_s1 + $0xd0] sm:$0xff]  ;;  %v871_v21 = vld [vmem:[%s1922_s1 + $0xd8] sm:$0xff] }
   0x8   :  { %v1292_v22 = vpack.c.bf16 %v871_v21, %v870_v20  ;;  %v872_v23 = vld [vmem:[%s1922_s1 + $0xe0] sm:$0xff]  ;;  %v873_v24 = vld [vmem:[%s1922_s1 + $0xe8] sm:$0xff]  ;;  %v874_v26 = vld [vmem:[%s1922_s1 + $0xf0] sm:$0xff] }
   0x9   :  { %1279 = vmatpush3.bf16.msra.mxu0 %v1276_v6  ;;  %v1296_v25 = vpack.c.bf16 %v873_v24, %v872_v23  ;;  %v875_v27 = vld [vmem:[%s1922_s1 + $0xf8] sm:$0xff]  ;;  %v42_v29 = vld [vmem:[%s1922_s1] sm:$0xff]  ;;  %v43_v30 = vld [vmem:[%s1922_s1 + $0x8] sm:$0xff] }
   0xa   :  { %1281 = vmatprep.subr.bf16.mxu0 %v1280_v9  ;;  %v1300_v28 = vpack.c.bf16 %v875_v27, %v874_v26  ;;  %v1304_v31 = vpack.c.bf16 %v43_v30, %v42_v29  ;;  %v44_v32 = vld [vmem:[%s1922_s1 + $0x10] sm:$0xff]  ;;  %v45_v33 = vld [vmem:[%s1922_s1 + $0x18] sm:$0xff]  ;;  %v46_v35 = vld [vmem:[%s1922_s1 + $0x20] sm:$0xff] }
   0xb   :  { %v1308_v34 = vpack.c.bf16 %v45_v33, %v44_v32  ;;  %v47_v36 = vld [vmem:[%s1922_s1 + $0x28] sm:$0xff]  ;;  %v48_v39 = vld [vmem:[%s1922_s1 + $0x30] sm:$0xff]  ;;  %v49_v40 = vld [vmem:[%s1922_s1 + $0x38] sm:$0xff] }
   0xc   :  { %v1312_v37 = vpack.c.bf16 %v47_v36, %v46_v35  ;;  %v38_v38 = vld [vmem:[#allocation2] sm:$0xff]  ;;  %v1316_v41 = vpack.c.bf16 %v49_v40, %v48_v39  ;;  %v51_v43 = vld [vmem:[%s1922_s1 + $0x48] sm:$0xff]  ;;  %v52_v45 = vld [vmem:[%s1922_s1 + $0x50] sm:$0xff] }
   0xd   :  { %1283 = vmatpush3.bf16.msra.mxu0 %v1280_v9  ;;  %v50_v42 = vld [vmem:[%s1922_s1 + $0x40] sm:$0xff]  ;;  %v53_v46 = vld [vmem:[%s1922_s1 + $0x58] sm:$0xff]  ;;  %v55_v49 = vld [vmem:[%s1922_s1 + $0x68] sm:$0xff] }
   0xe   :  { %1285 = vmatprep.subr.bf16.mxu0 %v1284_v14  ;;  %v1320_v44 = vpack.c.bf16 %v51_v43, %v50_v42  ;;  %v1324_v47 = vpack.c.bf16 %v53_v46, %v52_v45  ;;  %v54_v48 = vld [vmem:[%s1922_s1 + $0x60] sm:$0xff]  ;;  %v56_v51 = vld [vmem:[%s1922_s1 + $0x70] sm:$0xff]  ;;  %v57_v52 = vld [vmem:[%s1922_s1 + $0x78] sm:$0xff] }
   0xf   :  { %v1328_v50 = vpack.c.bf16 %v55_v49, %v54_v48  ;;  %v1332_v53 = vpack.c.bf16 %v57_v52, %v56_v51  ;;  %v876_v54 = vld [vmem:[%s1922_s1 + $0x100] sm:$0xff]  ;;  %v877_v55 = vld [vmem:[%s1922_s1 + $0x108] sm:$0xff]  ;;  %v878_v57 = vld [vmem:[%s1922_s1 + $0x110] sm:$0xff] }
  0x10   :  { %v1336_v56 = vpack.c.bf16 %v877_v55, %v876_v54  ;;  %v879_v58 = vld [vmem:[%s1922_s1 + $0x118] sm:$0xff]  ;;  %v39_v59 = vld [vmem:[#allocation2 + $0x8] sm:$0xff]  ;;  %v880_v62 = vld [vmem:[%s1922_s1 + $0x120] sm:$0xff] }
  0x11   :  { %1287 = vmatpush3.bf16.msra.mxu0 %v1284_v14  ;;  %v1340_v60 = vpack.c.bf16 %v879_v58, %v878_v57  ;;  %v40_v61 = vld [vmem:[#allocation2 + $0x18] sm:$0xff]  ;;  %v881_v63 = vld [vmem:[%s1922_s1 + $0x128] sm:$0xff]  ;;  %v41_v0 = vld [vmem:[#allocation2 + $0x20] sm:$0xff] }
  0x12   :  { %1289 = vmatprep.subr.bf16.mxu0 %v1288_v19  ;;  %v1344_v1 = vpack.c.bf16 %v881_v63, %v880_v62  ;;  %v249_v2 = vld [vmem:[#allocation2 + $0x2] sm:$0xff]  ;;  %v882_v3 = vld [vmem:[%s1922_s1 + $0x130] sm:$0xff]  ;;  %v883_v4 = vld [vmem:[%s1922_s1 + $0x138] sm:$0xff] }
  0x13   :  { %v1348_v5 = vpack.c.bf16 %v883_v4, %v882_v3  ;;  %v884_v6 = vld [vmem:[%s1922_s1 + $0x140] sm:$0xff]  ;;  %v885_v7 = vld [vmem:[%s1922_s1 + $0x148] sm:$0xff]  ;;  %v886_v9 = vld [vmem:[%s1922_s1 + $0x150] sm:$0xff] }
  0x14   :  { %v1352_v8 = vpack.c.bf16 %v885_v7, %v884_v6  ;;  %v887_v10 = vld [vmem:[%s1922_s1 + $0x158] sm:$0xff]  ;;  %v888_v12 = vld [vmem:[%s1922_s1 + $0x160] sm:$0xff]  ;;  %v890_v15 = vld [vmem:[%s1922_s1 + $0x170] sm:$0xff] }
  0x15   :  { %1291 = vmatpush3.bf16.msra.mxu0 %v1288_v19  ;;  %v1356_v11 = vpack.c.bf16 %v887_v10, %v886_v9  ;;  %v891_v16 = vld [vmem:[%s1922_s1 + $0x178] sm:$0xff]  ;;  %v252_v20 = vld [vmem:[#allocation2 + $0x22] sm:$0xff]  ;;  %v894_v58 = vld [vmem:[%s1924_s2 + $0x90] sm:$0xff] }
  0x16   :  { %1293 = vmatprep.subr.bf16.mxu0 %v1292_v22  ;;  %v251_v19 = vld [vmem:[#allocation2 + $0x1a] sm:$0xff]  ;;  %v898_v4 = vld [vmem:[%s1924_s2 + $0xb0] sm:$0xff] }
  0x17   :  { %v892_v55 = vld [vmem:[%s1924_s2 + $0x80] sm:$0xff]  ;;  %v902_v10 = vld [vmem:[%s1924_s2 + $0xd0] sm:$0xff] }
  0x18   :  { %v896_v63 = vld [vmem:[%s1924_s2 + $0xa0] sm:$0xff] }
  0x19   :  { %1295 = vmatpush3.bf16.msra.mxu0 %v1292_v22  ;;  %v900_v7 = vld [vmem:[%s1924_s2 + $0xc0] sm:$0xff] }
  0x1a   :  { %1297 = vmatprep.subr.bf16.mxu0 %v1296_v25 }
  0x1d   :  { %1299 = vmatpush3.bf16.msra.mxu0 %v1296_v25 }
  0x1e   :  { %1301 = vmatprep.subr.bf16.mxu0 %v1300_v28 }
  0x21   :  { %1303 = vmatpush3.bf16.msra.mxu0 %v1300_v28 }
  0x22   :  { %1305 = vmatprep.subr.bf16.mxu0 %v1304_v31 }
  0x24   :  { %1077 = vmatmul.mubr.f32.vlgmr.msra.gmra.mrb[0].mxu0 %v27_v13  ;;  %v889_v13 = vld [vmem:[%s1922_s1 + $0x168] sm:$0xff]  ;;  %s1490_s1 = smov 8  }
  0x25   :  { %1307 = vmatpush3.bf16.msra.mxu0 %v1304_v31  ;;  %1079 = vmatprep.mubr.f32.mxu0 %v28_v17  ;;  %v1360_v14 = vpack.c.bf16 %v889_v13, %v888_v12  ;;  %v1364_v17 = vpack.c.bf16 %v891_v16, %v890_v15  ;;  %v904_v13 = vld [vmem:[%s1924_s2 + $0xe0] sm:$0xff]  ;;  %v906_v16 = vld [vmem:[%s1924_s2 + $0xf0] sm:$0xff] }
  0x26   :  { %1309 = vmatprep.subr.bf16.mxu0 %v1308_v34 }
  0x28   :  { %1080 = vmatmul.mubr.f32.gmra.mrb[2].mxu0 %v29_v18  ;;  %v250_v18 = vld [vmem:[#allocation2 + $0xa] sm:$0xff] }
  0x29   :  { %1311 = vmatpush3.bf16.msra.mxu0 %v1308_v34  ;;  %1114 = vmatprep.mubr.f32.mxu0 %v38_v38 }
  0x2a   :  { %1313 = vmatprep.subr.bf16.mxu0 %v1312_v37 }
  0x2d   :  { %1315 = vmatpush3.bf16.msra.mxu0 %v1312_v37 }
  0x2e   :  { %1317 = vmatprep.subr.bf16.mxu0 %v1316_v41 }
  0x31   :  { %1319 = vmatpush3.bf16.msra.mxu0 %v1316_v41 }
  0x32   :  { %1321 = vmatprep.subr.bf16.mxu0 %v1320_v44 }
  0x35   :  { %1323 = vmatpush3.bf16.msra.mxu0 %v1320_v44 }
  0x36   :  { %1325 = vmatprep.subr.bf16.mxu0 %v1324_v47 }
  0x39   :  { %1327 = vmatpush3.bf16.msra.mxu0 %v1324_v47 }
  0x3a   :  { %1329 = vmatprep.subr.bf16.mxu0 %v1328_v50 }
  0x3d   :  { %1331 = vmatpush3.bf16.msra.mxu0 %v1328_v50 }
  0x3e   :  { %1333 = vmatprep.subr.bf16.mxu0 %v1332_v53 }
  0x41   :  { %1335 = vmatpush3.bf16.msra.mxu0 %v1332_v53 }
  0x42   :  { %1337 = vmatprep.subr.bf16.mxu0 %v1336_v56 }
  0x44   :  { %1115 = vmatmul.mubr.f32.vlgmr.msra.gmra.mrb[0].mxu0 %v39_v59  ;;  %v895_v59 = vld [vmem:[%s1924_s2 + $0x98] sm:$0xff] }
  0x45   :  { %1339 = vmatpush3.bf16.msra.mxu0 %v1336_v56  ;;  %1117 = vmatprep.mubr.f32.mxu0 %v40_v61  ;;  %v893_v56 = vld [vmem:[%s1924_s2 + $0x88] sm:$0xff] }
  0x46   :  { %1341 = vmatprep.subr.bf16.mxu0 %v1340_v60  ;;  %v1368_v57 = vpack.c.bf16 %v893_v56, %v892_v55  ;;  %v455_v55 = vld [vmem:[%s1924_s2 + $0x10] sm:$0xff] }
  0x48   :  { %1118 = vmatmul.mubr.f32.gmra.mrb[2].mxu0 %v41_v0  ;;  %1369 = vmatprep.subr.bf16.mxu1 %v1368_v57  ;;  %v897_v0 = vld [vmem:[%s1924_s2 + $0xa8] sm:$0xff] }
  0x49   :  { %1343 = vmatpush3.bf16.msra.mxu0 %v1340_v60  ;;  %1152 = vmatprep.mubr.f32.mxu0 %v249_v2  ;;  %v1372_v60 = vpack.c.bf16 %v895_v59, %v894_v58  ;;  %v458_v59 = vld [vmem:[%s1924_s2 + $0x28] sm:$0xff] }
  0x4a   :  { %1345 = vmatprep.subr.bf16.mxu0 %v1344_v1  ;;  %1371 = vmatpush3.bf16.msra.mxu1 %v1368_v57 }
  0x4b   :  { %1373 = vmatprep.subr.bf16.mxu1 %v1372_v60 }
  0x4d   :  { %1347 = vmatpush3.bf16.msra.mxu0 %v1344_v1  ;;  %v1376_v1 = vpack.c.bf16 %v897_v0, %v896_v63 }
  0x4e   :  { %1349 = vmatprep.subr.bf16.mxu0 %v1348_v5  ;;  %1375 = vmatpush3.bf16.msra.mxu1 %v1372_v60 }
  0x4f   :  { %1377 = vmatprep.subr.bf16.mxu1 %v1376_v1 }
  0x51   :  { %1351 = vmatpush3.bf16.msra.mxu0 %v1348_v5  ;;  %v899_v5 = vld [vmem:[%s1924_s2 + $0xb8] sm:$0xff] }
  0x52   :  { %1353 = vmatprep.subr.bf16.mxu0 %v1352_v8  ;;  %1379 = vmatpush3.bf16.msra.mxu1 %v1376_v1  ;;  %v1380_v6 = vpack.c.bf16 %v899_v5, %v898_v4  ;;  %v461_v1 = vld [vmem:[%s1924_s2 + $0x40] sm:$0xff]  ;;  %v463_v4 = vld [vmem:[%s1924_s2 + $0x50] sm:$0xff]  ;;  %v464_v5 = vld [vmem:[%s1924_s2 + $0x58] sm:$0xff] }
  0x54   :  { %1381 = vmatprep.subr.bf16.mxu1 %v1380_v6 }
  0x55   :  { %1355 = vmatpush3.bf16.msra.mxu0 %v1352_v8  ;;  %v901_v8 = vld [vmem:[%s1924_s2 + $0xc8] sm:$0xff] }
  0x56   :  { %1357 = vmatprep.subr.bf16.mxu0 %v1356_v11  ;;  %1383 = vmatpush3.bf16.msra.mxu1 %v1380_v6  ;;  %v1384_v9 = vpack.c.bf16 %v901_v8, %v900_v7  ;;  %v1420_v6 = vpack.c.bf16 %v464_v5, %v463_v4  ;;  %v465_v7 = vld [vmem:[%s1924_s2 + $0x60] sm:$0xff]  ;;  %v466_v8 = vld [vmem:[%s1924_s2 + $0x68] sm:$0xff] }
  0x58   :  { %1385 = vmatprep.subr.bf16.mxu1 %v1384_v9 }
  0x59   :  { %1359 = vmatpush3.bf16.msra.mxu0 %v1356_v11  ;;  %v903_v11 = vld [vmem:[%s1924_s2 + $0xd8] sm:$0xff] }
  0x5a   :  { %1361 = vmatprep.subr.bf16.mxu0 %v1360_v14  ;;  %1387 = vmatpush3.bf16.msra.mxu1 %v1384_v9  ;;  %v1388_v12 = vpack.c.bf16 %v903_v11, %v902_v10  ;;  %v1424_v9 = vpack.c.bf16 %v466_v8, %v465_v7  ;;  %v467_v10 = vld [vmem:[%s1924_s2 + $0x70] sm:$0xff]  ;;  %v468_v11 = vld [vmem:[%s1924_s2 + $0x78] sm:$0xff] }
  0x5c   :  { %1389 = vmatprep.subr.bf16.mxu1 %v1388_v12 }
  0x5d   :  { %1363 = vmatpush3.bf16.msra.mxu0 %v1360_v14  ;;  %v905_v14 = vld [vmem:[%s1924_s2 + $0xe8] sm:$0xff] }
  0x5e   :  { %1365 = vmatprep.subr.bf16.mxu0 %v1364_v17  ;;  %1391 = vmatpush3.bf16.msra.mxu1 %v1388_v12  ;;  %v1392_v15 = vpack.c.bf16 %v905_v14, %v904_v13  ;;  %v1428_v12 = vpack.c.bf16 %v468_v11, %v467_v10  ;;  %v908_v13 = vld [vmem:[%s1924_s2 + $0x100] sm:$0xff]  ;;  %v909_v14 = vld [vmem:[%s1924_s2 + $0x108] sm:$0xff] }
  0x60   :  { %1393 = vmatprep.subr.bf16.mxu1 %v1392_v15 }
  0x61   :  { %1367 = vmatpush3.bf16.msra.mxu0 %v1364_v17  ;;  %v907_v17 = vld [vmem:[%s1924_s2 + $0xf8] sm:$0xff] }
  0x62   :  { %1395 = vmatpush3.bf16.msra.mxu1 %v1392_v15  ;;  %v1432_v15 = vpack.c.bf16 %v909_v14, %v908_v13 }
  0x64   :  { %1153 = vmatmul.mubr.f32.vlgmr.msra.gmra.mrb[0].mxu0 %v250_v18  ;;  %v1396_v18 = vpack.c.bf16 %v907_v17, %v906_v16  ;;  %v910_v16 = vld [vmem:[%s1924_s2 + $0x110] sm:$0xff]  ;;  %v911_v17 = vld [vmem:[%s1924_s2 + $0x118] sm:$0xff] }
  0x65   :  { %1155 = vmatprep.mubr.f32.mxu0 %v251_v19  ;;  %v453_v19 = vld [vmem:[%s1924_s2] sm:$0xff] }
  0x66   :  { %1397 = vmatprep.subr.bf16.mxu1 %v1396_v18 }
  0x67   :  { %1399 = vmatpush3.bf16.msra.mxu1 %v1396_v18  ;;  %v1436_v18 = vpack.c.bf16 %v911_v17, %v910_v16 }
  0x68   :  { %1156 = vmatmul.mubr.f32.gmra.mrb[2].mxu0 %v252_v20  ;;  %v454_v20 = vld [vmem:[%s1924_s2 + $0x8] sm:$0xff] }
 0x137   :  { %v1690_v21 = vpop.f32.mrb[0].mxu0 }
 0x138   :  { %v369_v22 = vmul.f32 %v1690_v21, %v1690_v21  ;;  %v1694_v23 = vpop.f32.mrb[1].mxu0 }
 0x139   :  { %v359_v24 = vadd.f32 %v1690_v21, %v1694_v23  ;;  %v368_v25 = vmul.f32 %v1694_v23, %v1694_v23 }
 0x13b   :  { %v372_v26 = vadd.f32 %v369_v22, %v368_v25  ;;  %v1700_v27 = vpop.f32.mrb[2].mxu0  ;;  %v1400_v22 = vpack.c.bf16 %v454_v20, %v453_v19  ;;  %v912_v20 = vld [vmem:[%s1924_s2 + $0x120] sm:$0xff] }
 0x13c   :  { %v1702_v28 = vpop.f32.mrb[3].mxu0  ;;  %v371_v31 = vmul.f32 %v1700_v27, %v1700_v27 }
 0x13d   :  { %v360_v29 = vadd.f32 %v359_v24, %v1702_v28  ;;  %v370_v30 = vmul.f32 %v1702_v28, %v1702_v28  ;;  %1401 = vmatprep.subr.bf16.mxu1 %v1400_v22 }
 0x13f   :  { %v361_v32 = vadd.f32 %v1700_v27, %v360_v29  ;;  %v373_v33 = vadd.f32 %v372_v26, %v370_v30 }
 0x141   :  { %v362_v34 = vrot.slane %v361_v32, 4  ;;  %v374_v35 = vadd.f32 %v373_v33, %v371_v31 }
 0x143   :  { %v375_v36 = vrot.slane %v374_v35, 4  ;;  %v363_v37 = vadd.f32 %v362_v34, %v361_v32 }
 0x145   :  { %v376_v38 = vadd.f32 %v375_v36, %v374_v35  ;;  %v364_v39 = vrot.slane %v363_v37, 2  ;;  %v418_v36 = vlaneseq }
 0x147   :  { %v365_v40 = vadd.f32 %v364_v39, %v363_v37  ;;  %v377_v41 = vrot.slane %v376_v38, 2  ;;  %v419_v37 = vshrl.u32 %v418_v36, 7  ;;  %v918_v36 = vld [vmem:[%s1924_s2 + $0x150] sm:$0xff] }
 0x149   :  { %v366_v42 = vrot.slane %v365_v40, 1  ;;  %v378_v43 = vadd.f32 %v377_v41, %v376_v38  ;;  %v410_v38 = vld [vmem:[%s1925_s3] sm:$0x1]  ;;  %v1775_v39 = vsub.s32 0, %v419_v37  ;;  %v919_v37 = vld [vmem:[%s1924_s2 + $0x158] sm:$0xff] }
 0x14b   :  { %v367_v44 = vadd.f32 %v366_v42, %v365_v40  ;;  %v379_v45 = vrot.slane %v378_v43, 1  ;;  %v414_v42 = vld [vmem:[%s1926_s5] sm:$0x1] }
 0x14d   :  { %381 = vrot.lane.b32.xlu0 %v367_v44, %s1490_s1  ;;  %v380_v46 = vadd.f32 %v379_v45, %v378_v43 }
 0x151   :  { %394 = vrot.lane.b32.xlu0 %v380_v46, %s1490_s1 }
 0x1bf   :  { %v382_v47 = vpop.permute.xlu0 %381 }
 0x1c0   :  { %v383_v48 = vadd.f32 %v382_v47, %v367_v44 }
 0x1c2   :  { %384 = vrot.lane.b32.xlu1 %v383_v48, %s1491_s10 }
 0x1c3   :  { %v395_v49 = vpop.permute.xlu0 %394 }
 0x1c4   :  { %v396_v50 = vadd.f32 %v395_v49, %v380_v46 }
 0x1c6   :  { %397 = vrot.lane.b32.xlu1 %v396_v50, %s1491_s10 }
 0x234   :  { %v385_v51 = vpop.permute.xlu1 %384 }
 0x235   :  { %v386_v52 = vadd.f32 %v385_v51, %v383_v48 }
 0x237   :  { %387 = vrot.lane.b32.xlu0 %v386_v52, %s1492_s11 }
 0x238   :  { %v398_v53 = vpop.permute.xlu1 %397 }
 0x239   :  { %v399_v54 = vadd.f32 %v398_v53, %v396_v50 }
 0x23b   :  { %400 = vrot.lane.b32.xlu1 %v399_v54, %s1492_s11 }
 0x2a9   :  { %v388_v61 = vpop.permute.xlu0 %387 }
 0x2aa   :  { %v389_v62 = vadd.f32 %v388_v61, %v386_v52  ;;  %v459_v61 = vld [vmem:[%s1924_s2 + $0x30] sm:$0xff] }
 0x2ac   :  { %390 = vrot.lane.b32.xlu0 %v389_v62, %s1493_s23 }
 0x2ad   :  { %v401_v2 = vpop.permute.xlu1 %400 }
 0x2ae   :  { %v402_v3 = vadd.f32 %v401_v2, %v399_v54  ;;  %v462_v2 = vld [vmem:[%s1924_s2 + $0x48] sm:$0xff] }
 0x2b0   :  { %403 = vrot.lane.b32.xlu1 %v402_v3, %s1493_s23 }
 0x31e   :  { %v391_v24 = vpop.permute.xlu0 %390 }
 0x31f   :  { %v392_v25 = vadd.f32 %v391_v24, %v389_v62  ;;  %v460_v62 = vld [vmem:[%s1924_s2 + $0x38] sm:$0xff] }
 0x320   :  { %v1412_v0 = vpack.c.bf16 %v460_v62, %v459_v61 }
 0x321   :  { %v393_v26 = vmul.f32 0.001953125, %v392_v25 }
 0x322   :  { %v404_v29 = vpop.permute.xlu1 %403 }
 0x323   :  { %v405_v30 = vadd.f32 %v404_v29, %v402_v3  ;;  %v407_v31 = vmul.f32 %v393_v26, %v393_v26  ;;  %v1416_v3 = vpack.c.bf16 %v462_v2, %v461_v1  ;;  %v914_v29 = vld [vmem:[%s1924_s2 + $0x130] sm:$0xff] }
 0x325   :  { %v406_v32 = vmul.f32 0.001953125, %v405_v30  ;;  %v915_v30 = vld [vmem:[%s1924_s2 + $0x138] sm:$0xff] }
 0x327   :  { %v408_v33 = vsub.f32 %v406_v32, %v407_v31  ;;  %v1444_v32 = vpack.c.bf16 %v915_v30, %v914_v29 }
 0x329   :  { %v409_v34 = vmax.f32 %v408_v33, 0.0  ;;  %v916_v33 = vld [vmem:[%s1924_s2 + $0x140] sm:$0xff] }
 0x32b   :  { %v411_v35 = vadd.f32 1e-05, %v409_v34  ;;  %v917_v34 = vld [vmem:[%s1924_s2 + $0x148] sm:$0xff] }
 0x32d   :  { %1485 = vrsqrt.f32 %v411_v35  ;;  %v1448_v35 = vpack.c.bf16 %v917_v34, %v916_v33  ;;  %v821_v33 = vld [vmem:[%s1927_s4] sm:$0x1] }
 0x337   :  { %v1486_v40 = vpop.eup %1485 }
 0x338   :  { %v413_v41 = vmul.f32 %v1486_v40, %v410_v38  ;;  %v1452_v38 = vpack.c.bf16 %v919_v37, %v918_v36  ;;  %v920_v40 = vld [vmem:[%s1924_s2 + $0x160] sm:$0xff] }
 0x339   :  { %v825_v36 = vld [vmem:[%s1928_s6] sm:$0x1] }
 0x33a   :  { %v415_v43 = vmul.f32 %v413_v41, %v393_v26  ;;  %v421_v44 = vrot.slane %v413_v41, %v1775_v39  ;;  %v921_v41 = vld [vmem:[%s1924_s2 + $0x168] sm:$0xff] }
 0x33c   :  { %v416_v45 = vsub.f32 %v414_v42, %v415_v43  ;;  %v423_v46 = vmul.f32 %v421_v44, %v1694_v23  ;;  %v424_v47 = vmul.f32 %v1690_v21, %v421_v44  ;;  %v425_v48 = vmul.f32 %v421_v44, %v1702_v28  ;;  %v456_v23 = vld [vmem:[%s1924_s2 + $0x18] sm:$0xff]  ;;  %v922_v43 = vld [vmem:[%s1924_s2 + $0x170] sm:$0xff] }
 0x33d   :  { %v426_v49 = vmul.f32 %v1700_v27, %v421_v44  ;;  %v1404_v58 = vpack.c.bf16 %v456_v23, %v455_v55  ;;  %v457_v27 = vld [vmem:[%s1924_s2 + $0x20] sm:$0xff]  ;;  %v1456_v42 = vpack.c.bf16 %v921_v41, %v920_v40  ;;  %v923_v44 = vld [vmem:[%s1924_s2 + $0x178] sm:$0xff] }
 0x33e   :  { %v431_v50 = vrot.slane %v416_v45, %v1775_v39  ;;  %v1408_v60 = vpack.c.bf16 %v458_v59, %v457_v27  ;;  %v1460_v45 = vpack.c.bf16 %v923_v44, %v922_v43 }
 0x340   :  { %v433_v51 = vadd.f32 %v431_v50, %v423_v46  ;;  %v434_v52 = vadd.f32 %v431_v50, %v424_v47  ;;  %v435_v53 = vadd.f32 %v431_v50, %v425_v48  ;;  %v436_v54 = vadd.f32 %v431_v50, %v426_v49 }
 0x342   :  { %v437_v56 = vmax.f32 %v433_v51, 0.0  ;;  %v438_v21 = vmax.f32 %v434_v52, 0.0  ;;  %v439_v57 = vmax.f32 %v435_v53, 0.0  ;;  %v440_v28 = vmax.f32 %v436_v54, 0.0 }
 0x344   :  { %445 = vst [vmem:[#allocation3 + $0x1] sm:$0xff] %v437_v56  ;;  %446 = vst [vmem:[#allocation3 + $0x9] sm:$0xff] %v438_v21  ;;  %1190 = vmatprep.mubr.f32.mxu1 %v437_v56 }
 0x345   :  { %447 = vst [vmem:[#allocation3 + $0x19] sm:$0xff] %v439_v57  ;;  %448 = vst [vmem:[#allocation3 + $0x21] sm:$0xff] %v440_v28  ;;  %1191 = vmatmul.mubr.f32.vlgmr.msra.gmra.mrb[0].mxu1 %v438_v21 }
 0x346   :  { %1403 = vmatpush3.bf16.msra.mxu1 %v1400_v22  ;;  %1193 = vmatprep.mubr.f32.mxu1 %v439_v57  ;;  %v913_v22 = vld [vmem:[%s1924_s2 + $0x128] sm:$0xff] }
 0x347   :  { %1405 = vmatprep.subr.bf16.mxu1 %v1404_v58  ;;  %v1440_v25 = vpack.c.bf16 %v913_v22, %v912_v20 }
 0x349   :  { %1194 = vmatmul.mubr.f32.gmra.mrb[2].mxu1 %v440_v28 }
 0x34a   :  { %1407 = vmatpush3.bf16.msra.mxu1 %v1404_v58 }
 0x34b   :  { %v449_v63 = vld [vmem:[#allocation3] sm:$0xff]  ;;  %1409 = vmatprep.subr.bf16.mxu1 %v1408_v60  ;;  %v450_v19 = vld [vmem:[#allocation3 + $0x8] sm:$0xff] }
 0x34c   :  { %1228 = vmatprep.mubr.f32.mxu1 %v449_v63  ;;  %v451_v24 = vld [vmem:[#allocation3 + $0x18] sm:$0xff]  ;;  %v452_v26 = vld [vmem:[#allocation3 + $0x20] sm:$0xff]  ;;  %v661_v46 = vld [vmem:[#allocation3 + $0xa] sm:$0xff] }
 0x34d   :  { %v660_v31 = vld [vmem:[#allocation3 + $0x2] sm:$0xff]  ;;  %v662_v47 = vld [vmem:[#allocation3 + $0x1a] sm:$0xff] }
 0x34e   :  { %1411 = vmatpush3.bf16.msra.mxu1 %v1408_v60  ;;  %v663_v48 = vld [vmem:[#allocation3 + $0x22] sm:$0xff] }
 0x34f   :  { %1413 = vmatprep.subr.bf16.mxu1 %v1412_v0 }
 0x352   :  { %1415 = vmatpush3.bf16.msra.mxu1 %v1412_v0 }
 0x353   :  { %1417 = vmatprep.subr.bf16.mxu1 %v1416_v3 }
 0x356   :  { %1419 = vmatpush3.bf16.msra.mxu1 %v1416_v3 }
 0x357   :  { %1421 = vmatprep.subr.bf16.mxu1 %v1420_v6 }
 0x35a   :  { %1423 = vmatpush3.bf16.msra.mxu1 %v1420_v6 }
 0x35b   :  { %1425 = vmatprep.subr.bf16.mxu1 %v1424_v9 }
 0x35e   :  { %1427 = vmatpush3.bf16.msra.mxu1 %v1424_v9 }
 0x35f   :  { %1429 = vmatprep.subr.bf16.mxu1 %v1428_v12 }
 0x362   :  { %1431 = vmatpush3.bf16.msra.mxu1 %v1428_v12 }
 0x363   :  { %1433 = vmatprep.subr.bf16.mxu1 %v1432_v15 }
 0x365   :  { %1229 = vmatmul.mubr.f32.vlgmr.msra.gmra.mrb[0].mxu1 %v450_v19 }
 0x366   :  { %1231 = vmatprep.mubr.f32.mxu1 %v451_v24  ;;  %1435 = vmatpush3.bf16.msra.mxu1 %v1432_v15 }
 0x367   :  { %1437 = vmatprep.subr.bf16.mxu1 %v1436_v18 }
 0x369   :  { %1232 = vmatmul.mubr.f32.gmra.mrb[2].mxu1 %v452_v26 }
 0x36a   :  { %1439 = vmatpush3.bf16.msra.mxu1 %v1436_v18  ;;  %1266 = vmatprep.mubr.f32.mxu1 %v660_v31 }
 0x36b   :  { %1441 = vmatprep.subr.bf16.mxu1 %v1440_v25 }
 0x36e   :  { %1443 = vmatpush3.bf16.msra.mxu1 %v1440_v25 }
 0x36f   :  { %1445 = vmatprep.subr.bf16.mxu1 %v1444_v32 }
 0x372   :  { %1447 = vmatpush3.bf16.msra.mxu1 %v1444_v32 }
 0x373   :  { %1449 = vmatprep.subr.bf16.mxu1 %v1448_v35 }
 0x376   :  { %1451 = vmatpush3.bf16.msra.mxu1 %v1448_v35 }
 0x377   :  { %1453 = vmatprep.subr.bf16.mxu1 %v1452_v38 }
 0x37a   :  { %1455 = vmatpush3.bf16.msra.mxu1 %v1452_v38 }
 0x37b   :  { %1457 = vmatprep.subr.bf16.mxu1 %v1456_v42 }
 0x37e   :  { %1459 = vmatpush3.bf16.msra.mxu1 %v1456_v42 }
 0x37f   :  { %1461 = vmatprep.subr.bf16.mxu1 %v1460_v45 }
 0x382   :  { %1463 = vmatpush3.bf16.msra.mxu1 %v1460_v45 }
 0x385   :  { %1267 = vmatmul.mubr.f32.vlgmr.msra.gmra.mrb[0].mxu1 %v661_v46 }
 0x386   :  { %1269 = vmatprep.mubr.f32.mxu1 %v662_v47 }
 0x389   :  { %1270 = vmatmul.mubr.f32.gmra.mrb[2].mxu1 %v663_v48 }
 0x458   :  { %v1876_v49 = vpop.f32.mrb[0].mxu1 }
 0x459   :  { %v780_v50 = vmul.f32 %v1876_v49, %v1876_v49  ;;  %v1880_v51 = vpop.f32.mrb[1].mxu1 }
 0x45a   :  { %v770_v52 = vadd.f32 %v1876_v49, %v1880_v51  ;;  %v779_v53 = vmul.f32 %v1880_v51, %v1880_v51 }
 0x45c   :  { %v783_v54 = vadd.f32 %v780_v50, %v779_v53  ;;  %v1886_v55 = vpop.f32.mrb[2].mxu1 }
 0x45d   :  { %v757_v23 = vpop.f32.mrb[3].mxu1  ;;  %v782_v57 = vmul.f32 %v1886_v55, %v1886_v55 }
 0x45e   :  { %v771_v56 = vadd.f32 %v770_v52, %v757_v23  ;;  %v781_v21 = vmul.f32 %v757_v23, %v757_v23 }
 0x460   :  { %v772_v28 = vadd.f32 %v1886_v55, %v771_v56  ;;  %v784_v58 = vadd.f32 %v783_v54, %v781_v21 }
 0x462   :  { %v773_v27 = vrot.slane %v772_v28, 4  ;;  %v785_v59 = vadd.f32 %v784_v58, %v782_v57 }
 0x464   :  { %v774_v60 = vadd.f32 %v773_v27, %v772_v28  ;;  %v786_v61 = vrot.slane %v785_v59, 4 }
 0x466   :  { %v775_v62 = vrot.slane %v774_v60, 2  ;;  %v787_v63 = vadd.f32 %v786_v61, %v785_v59 }
 0x468   :  { %v776_v0 = vadd.f32 %v775_v62, %v774_v60  ;;  %v788_v1 = vrot.slane %v787_v63, 2 }
 0x46a   :  { %v777_v2 = vrot.slane %v776_v0, 1  ;;  %v789_v3 = vadd.f32 %v788_v1, %v787_v63 }
 0x46c   :  { %v778_v4 = vadd.f32 %v777_v2, %v776_v0  ;;  %v790_v5 = vrot.slane %v789_v3, 1 }
 0x46e   :  { %792 = vrot.lane.b32.xlu0 %v778_v4, %s1490_s1  ;;  %v791_v6 = vadd.f32 %v790_v5, %v789_v3 }
 0x470   :  { %805 = vrot.lane.b32.xlu1 %v791_v6, %s1490_s1 }
 0x4e0   :  { %v793_v7 = vpop.permute.xlu0 %792 }
 0x4e1   :  { %v794_v8 = vadd.f32 %v793_v7, %v778_v4 }
 0x4e2   :  { %v806_v9 = vpop.permute.xlu1 %805 }
 0x4e3   :  { %v807_v10 = vadd.f32 %v806_v9, %v791_v6  ;;  %795 = vrot.lane.b32.xlu0 %v794_v8, %s1491_s10 }
 0x4e5   :  { %808 = vrot.lane.b32.xlu1 %v807_v10, %s1491_s10 }
 0x555   :  { %v796_v11 = vpop.permute.xlu0 %795 }
 0x556   :  { %v797_v12 = vadd.f32 %v796_v11, %v794_v8 }
 0x557   :  { %v809_v13 = vpop.permute.xlu1 %808 }
 0x558   :  { %v810_v14 = vadd.f32 %v809_v13, %v807_v10  ;;  %798 = vrot.lane.b32.xlu0 %v797_v12, %s1492_s11 }
 0x55a   :  { %811 = vrot.lane.b32.xlu1 %v810_v14, %s1492_s11 }
 0x5ca   :  { %v799_v15 = vpop.permute.xlu0 %798 }
 0x5cb   :  { %v800_v16 = vadd.f32 %v799_v15, %v797_v12 }
 0x5cc   :  { %v812_v17 = vpop.permute.xlu1 %811 }
 0x5cd   :  { %v813_v18 = vadd.f32 %v812_v17, %v810_v14  ;;  %801 = vrot.lane.b32.xlu0 %v800_v16, %s1493_s23 }
 0x5cf   :  { %814 = vrot.lane.b32.xlu1 %v813_v18, %s1493_s23 }
 0x63f   :  { %v802_v19 = vpop.permute.xlu0 %801 }
 0x640   :  { %v803_v20 = vadd.f32 %v802_v19, %v800_v16 }
 0x641   :  { %v815_v22 = vpop.permute.xlu1 %814 }
 0x642   :  { %v804_v24 = vmul.f32 0.001953125, %v803_v20  ;;  %v816_v25 = vadd.f32 %v815_v22, %v813_v18 }
 0x644   :  { %v818_v26 = vmul.f32 %v804_v24, %v804_v24  ;;  %v817_v29 = vmul.f32 0.001953125, %v816_v25 }
 0x646   :  { %v819_v30 = vsub.f32 %v817_v29, %v818_v26 }
 0x648   :  { %v820_v31 = vmax.f32 %v819_v30, 0.0 }
 0x64a   :  { %v822_v32 = vadd.f32 1e-05, %v820_v31 }
 0x64c   :  { %1487 = vrsqrt.f32 %v822_v32 }
 0x656   :  { %v1488_v34 = vpop.eup %1487 }
 0x657   :  { %v824_v35 = vmul.f32 %v1488_v34, %v821_v33 }
 0x659   :  { %v826_v37 = vmul.f32 %v824_v35, %v804_v24  ;;  %v832_v38 = vrot.slane %v824_v35, %v1775_v39 }
 0x65b   :  { %v827_v40 = vsub.f32 %v825_v36, %v826_v37  ;;  %v834_v41 = vmul.f32 %v832_v38, %v1880_v51  ;;  %v835_v42 = vmul.f32 %v1876_v49, %v832_v38  ;;  %v836_v43 = vmul.f32 %v832_v38, %v757_v23 }
 0x65c   :  { %v837_v44 = vmul.f32 %v1886_v55, %v832_v38 }
 0x65d   :  { %v842_v45 = vrot.slane %v827_v40, %v1775_v39 }
 0x65f   :  { %v844_v46 = vadd.f32 %v842_v45, %v834_v41  ;;  %v845_v47 = vadd.f32 %v842_v45, %v835_v42  ;;  %v846_v48 = vadd.f32 %v842_v45, %v836_v43  ;;  %v847_v50 = vadd.f32 %v842_v45, %v837_v44 }
 0x661   :  { %v848_v52 = vmax.f32 %v844_v46, 0.0  ;;  %v849_v53 = vmax.f32 %v845_v47, 0.0  ;;  %v850_v54 = vmax.f32 %v846_v48, 0.0  ;;  %v851_v56 = vmax.f32 %v847_v50, 0.0 }
 0x663   :  { %852 = vst [vmem:[%s1929_s7] sm:$0xff] %v848_v52  ;;  %853 = vst [vmem:[%s1929_s7 + $0x8] sm:$0xff] %v849_v53 }
 0x664   :  { %854 = vst [vmem:[%s1929_s7 + $0x10] sm:$0xff] %v850_v54  ;;  %855 = vst [vmem:[%s1929_s7 + $0x18] sm:$0xff] %v851_v56 }

</bundles_post_ra>
